<compile_context>
chip_gen: v5e
topology: v5e:2x2
jax: 0.10.0
libtpu: 0.0.40
codegen_flags: <defaults>
</compile_context>

<pallas_src>
import functools

import jax
import jax.numpy as jnp
from jax import lax
from jax.experimental import pallas as pl
from jax.experimental.pallas import tpu as pltpu

P_DROP = 0.02
NUM_CLASSES = 102
LANE = 128
SUBLANE_BF16 = 16
DROP_THRESHOLD = int(round(P_DROP * (1 << 32)))       # drop iff hash_u32 < threshold
VMEM_TILE_BUDGET = 12 * 1024 * 1024                   # fits v5e's 16 MiB scoped default


def _round_up(x, m):
    return ((x + m - 1) // m) * m


def _cdiv(a, b):
    return (a + b - 1) // b


# --------------------------------------------------------------------------- #
# One-time parameter prep (do NOT call per forward step)                       #
# --------------------------------------------------------------------------- #
def prepare_classifier_params(w1, b1, w2, b2, *, training=True):
    """Pre-pad / pre-cast the classifier weights once.

    * w1, w2 stored bf16 (f32 MXU accumulation inside the kernel).
    * Class dim padded 102 -> 128 (lane-dense output); pad columns get a -1e30
      bias so log_softmax over the real classes is unchanged.
    * When training=True the dropout keep-scale 1/(1-p) is folded into w2, so
      the kernel's dropout is a pure zero-mask.  `training` must match the
      `apply_dropout` flag later passed to classifier_forward.
    """
    in_features, hidden = w1.shape
    n_classes = w2.shape[1]
    c_pad = _round_up(n_classes, LANE)

    scale = (1.0 / (1.0 - P_DROP)) if training else 1.0
    w2p = jnp.zeros((hidden, c_pad), jnp.float32).at[:, :n_classes].set(
        w2.astype(jnp.float32) * scale)
    b2p = jnp.full((1, c_pad), -1e30, jnp.float32).at[:, :n_classes].set(
        b2.reshape(1, -1).astype(jnp.float32))

    return dict(
        w1=w1.astype(jnp.bfloat16),                   # (K, H)
        b1=b1.reshape(1, -1).astype(jnp.float32),     # (1, H)
        w2=w2p.astype(jnp.bfloat16),                  # (H, C_pad)
        b2=b2p,                                       # (1, C_pad), -1e30 on pads
        n_classes=n_classes,
    )


# --------------------------------------------------------------------------- #
# Kernel                                                                       #
# --------------------------------------------------------------------------- #
def classifier_kernel(seed_ref, x_ref, w1_ref, b1_ref, w2_ref, b2_ref, o_ref,
                      *, tile_rows, apply_dropout):
    # ---- fc1 + ReLU: cast x to bf16 in-register (VPU work hidden under DMA),
    #      f32 accumulation on the MXU.
    x = x_ref[...].astype(jnp.bfloat16)
    h = jnp.dot(x, w1_ref[...], preferred_element_type=jnp.float32)
    h = jnp.maximum(h + b1_ref[...], 0.0)             # (TB, H) + (1, H)

    # ---- Dropout(p=0.02), training-mode semantics.
    if apply_dropout:
        # Counter-based mask: one xorshift-multiply hash round of
        # (seed, global linear index).  Keep-scale is folded into w2.
        hidden = h.shape[1]
        row0 = (pl.program_id(0) * tile_rows).astype(jnp.uint32)
        rows = lax.broadcasted_iota(jnp.uint32, h.shape, 0) + row0
        cols = lax.broadcasted_iota(jnp.uint32, h.shape, 1)
        idx = rows * jnp.uint32(hidden) + cols
        v = (idx * jnp.uint32(0x9E3779B9)
             + seed_ref[0].astype(jnp.uint32) * jnp.uint32(0x85EBCA6B))
        v = v ^ (v >> 16)
        v = v * jnp.uint32(0x7FEB352D)
        v = v ^ (v >> 15)
        h = jnp.where(v < jnp.uint32(DROP_THRESHOLD), 0.0, h)

    # ---- fc2 (bf16 activations into the MXU, f32 accumulation); pad lanes of
    #      b2 carry -1e30 so they vanish from the softmax.
    logits = jnp.dot(h.astype(w2_ref.dtype), w2_ref[...],
                     preferred_element_type=jnp.float32) + b2_ref[...]

    # ---- log_softmax over the lane-dense (padded) class dim.
    m = jnp.max(logits, axis=-1, keepdims=True)
    z = logits - m
    lse = jnp.log(jnp.sum(jnp.exp(z), axis=-1, keepdims=True))
    o_ref[...] = (z - lse).astype(o_ref.dtype)


# --------------------------------------------------------------------------- #
# Tiling heuristic                                                             #
# --------------------------------------------------------------------------- #
def _choose_batch_tile(B, in_features, hidden, c_pad, x_itemsize, out_itemsize,
                       max_tile_rows):
    # Split B into near-equal tiles so padding waste is bounded (~< one tile).
    n_tiles = max(1, _cdiv(B, max_tile_rows))
    # v7x megacore: keep >= 2 grid steps so both TensorCores get work.
    if n_tiles < 2 and B > SUBLANE_BF16:
        n_tiles = 2
    tb = _round_up(_cdiv(B, n_tiles), SUBLANE_BF16)

    # Shrink the tile if the double-buffered x/out tiles would crowd VMEM
    # (keeps a vgg16-style in_features=25088 safe on v5e's 16 MiB scoped default).
    # TODO(synk): for very large in_features a K-tiled grid axis ("arbitrary")
    # with an f32 fc1 accumulator would beat shrinking the batch tile.
    def vmem_bytes(t):
        x_buf = 2 * t * in_features * x_itemsize       # double-buffered x tile
        o_buf = 2 * t * c_pad * out_itemsize           # double-buffered out tile
        interm = t * hidden * 8 + t * c_pad * 4        # h + mask temps + logits
        return x_buf + o_buf + interm

    while tb > SUBLANE_BF16 and vmem_bytes(tb) > VMEM_TILE_BUDGET:
        tb = max(SUBLANE_BF16, _round_up(tb // 2, SUBLANE_BF16))

    b_pad = _round_up(B, tb)
    return tb, b_pad


# --------------------------------------------------------------------------- #
# Forward wrapper                                                              #
# --------------------------------------------------------------------------- #
def classifier_forward(x, params, seed, *, apply_dropout=True,
                       max_tile_rows=512, out_dtype=jnp.float32):
    """Forward pass.

    `params` comes from prepare_classifier_params (its `training` flag must
    match `apply_dropout`).  Callers must vary `seed` every training step,
    otherwise the exact same hidden units are dropped each step.
    """
    w1, b1, w2, b2 = params["w1"], params["b1"], params["w2"], params["b2"]
    n_classes = params["n_classes"]

    B = x.shape[0]
    x2 = x.reshape(B, -1)                 # flatten; keep native dtype (cast in-kernel)
    in_features, hidden = w1.shape
    c_pad = w2.shape[1]
    assert x2.shape[1] == in_features, "flattened input does not match fc1"

    tb, b_pad = _choose_batch_tile(B, in_features, hidden, c_pad,
                                   x2.dtype.itemsize,
                                   jnp.dtype(out_dtype).itemsize,
                                   max_tile_rows)
    if b_pad != B:
        x2 = jnp.pad(x2, ((0, b_pad - B), (0, 0)))
    grid = (b_pad // tb,)

    seed_arr = jnp.asarray([seed], dtype=jnp.int32)
    kernel = functools.partial(classifier_kernel,
                               tile_rows=tb, apply_dropout=apply_dropout)

    flops = 2 * b_pad * in_features * hidden + 2 * b_pad * hidden * c_pad
    bytes_accessed = (b_pad * in_features * x2.dtype.itemsize
                      + w1.size * w1.dtype.itemsize
                      + w2.size * w2.dtype.itemsize
                      + b1.size * b1.dtype.itemsize
                      + b2.size * b2.dtype.itemsize
                      + b_pad * c_pad * jnp.dtype(out_dtype).itemsize)
    cost = pl.CostEstimate(flops=flops,
                           transcendentals=b_pad * c_pad,
                           bytes_accessed=bytes_accessed)

    out = pl.pallas_call(
        kernel,
        out_shape=jax.ShapeDtypeStruct((b_pad, c_pad), out_dtype),
        grid_spec=pltpu.PrefetchScalarGridSpec(
            num_scalar_prefetch=1,                                   # seed -> SMEM
            grid=grid,
            in_specs=[
                pl.BlockSpec((tb, in_features), lambda i, seed: (i, 0)),      # x tile
                # Resident weights/biases: constant block index -> fetched once.
                pl.BlockSpec((in_features, hidden), lambda i, seed: (0, 0)),  # w1
                pl.BlockSpec((1, hidden), lambda i, seed: (0, 0)),            # b1
                pl.BlockSpec((hidden, c_pad), lambda i, seed: (0, 0)),        # w2
                pl.BlockSpec((1, c_pad), lambda i, seed: (0, 0)),             # b2
            ],
            out_specs=pl.BlockSpec((tb, c_pad), lambda i, seed: (i, 0)),
        ),
        compiler_params=pltpu.CompilerParams(
            dimension_semantics=("parallel",)),          # batch tiles across TCs
        cost_estimate=cost,
    )(seed_arr, x2, w1, b1, w2, b2)

    return out[:B, :n_classes]


# --------------------------------------------------------------------------- #
# Demo / self-test                                                             #
# --------------------------------------------------------------------------- #
def init_linear_params(key, in_features, out_features):
    """torch.nn.Linear-style init (uniform +/- 1/sqrt(in)); weight pre-transposed
    to (in_features, out_features)."""
    k_w, k_b = jax.random.split(key)
    bound = 1.0 / (in_features ** 0.5)
    w = jax.random.uniform(k_w, (in_features, out_features), jnp.float32, -bound, bound)
    b = jax.random.uniform(k_b, (out_features,), jnp.float32, -bound, bound)
    return w, b


if __name__ == "__main__":
    IN_FEATURES = 1024      # densenet121 arch
    HIDDEN_UNITS = 128
    BATCH = 8

    root = jax.random.PRNGKey(0)
    k_x, k_fc1, k_fc2 = jax.random.split(root, 3)

    # Densenet feature map (B, 1024, 1, 1) — flattened by the forward pass.
    x = jax.random.normal(k_x, (BATCH, IN_FEATURES, 1, 1), jnp.float32)
    w1, b1 = init_linear_params(k_fc1, IN_FEATURES, HIDDEN_UNITS)
    w2, b2 = init_linear_params(k_fc2, HIDDEN_UNITS, NUM_CLASSES)

    # ---- eval-mode numerics check vs a pure-JAX f32 reference (no dropout) ----
    eval_params = prepare_classifier_params(w1, b1, w2, b2, training=False)
    out_eval = jax.block_until_ready(
        classifier_forward(x, eval_params, seed=0, apply_dropout=False))
    ref = jax.nn.log_softmax(
        jnp.maximum(x.reshape(BATCH, -1) @ w1 + b1, 0.0) @ w2 + b2, axis=-1)
    assert out_eval.shape == (BATCH, NUM_CLASSES)
    assert float(jnp.max(jnp.abs(out_eval - ref))) < 5e-2, "mismatch vs f32 reference"

    # ---- training-mode run (dropout on; vary `seed` per step in real use) -----
    train_params = prepare_classifier_params(w1, b1, w2, b2, training=True)
    out_train = jax.block_until_ready(
        classifier_forward(x, train_params, seed=1234, apply_dropout=True))
    assert out_train.shape == (BATCH, NUM_CLASSES)
    row_lse = jax.scipy.special.logsumexp(out_train, axis=1)
    assert jnp.allclose(row_lse, 0.0, atol=1e-3)     # rows are valid log-probs

    print("KERNEL_OK")
</pallas_src>

<mosaic_0001>
module attributes {stable_mosaic.version = 11 : i64} {
  func.func @classifier_kernel(%arg0: i32, %arg1: memref<1xi32, #tpu.memory_space<smem>>, %arg2: memref<16x1024xf32, #tpu.memory_space<vmem>>, %arg3: memref<1024x128xbf16, #tpu.memory_space<vmem>>, %arg4: memref<1x128xf32, #tpu.memory_space<vmem>>, %arg5: memref<128x128xbf16, #tpu.memory_space<vmem>>, %arg6: memref<1x128xf32, #tpu.memory_space<vmem>>, %arg7: memref<16x128xf32, #tpu.memory_space<vmem>>) attributes {dimension_semantics = [#tpu.dimension_semantics<parallel>], iteration_bounds = array<i64: 1>, scalar_prefetch = 1 : i64, scratch_operands = 0 : i64, tpu.core_type = #tpu.core_type<tc>, window_params = [{transform_indices = @transform_0, window_bounds = array<i64: 16, 1024>}, {pipeline_mode = #tpu.pipeline_mode<synchronous>, transform_indices = @transform_1, window_bounds = array<i64: 1024, 128>}, {pipeline_mode = #tpu.pipeline_mode<synchronous>, transform_indices = @transform_2, window_bounds = array<i64: 1, 128>}, {pipeline_mode = #tpu.pipeline_mode<synchronous>, transform_indices = @transform_3, window_bounds = array<i64: 128, 128>}, {pipeline_mode = #tpu.pipeline_mode<synchronous>, transform_indices = @transform_4, window_bounds = array<i64: 1, 128>}, {transform_indices = @transform_5, window_bounds = array<i64: 16, 128>}]} {
    %c0 = arith.constant 0 : index
    %c0_0 = arith.constant 0 : index
    %0 = vector.load %arg2[%c0, %c0_0] : memref<16x1024xf32, #tpu.memory_space<vmem>>, vector<16x1024xf32>
    %1 = arith.truncf %0 : vector<16x1024xf32> to vector<16x1024xbf16>
    %c0_1 = arith.constant 0 : index
    %c0_2 = arith.constant 0 : index
    %2 = vector.load %arg3[%c0_1, %c0_2] : memref<1024x128xbf16, #tpu.memory_space<vmem>>, vector<1024x128xbf16>
    %cst = arith.constant dense<0.000000e+00> : vector<16x128xf32>
    %3 = tpu.matmul %1, %2, %cst {dimension_numbers = #tpu.dot_dimension_numbers<[1], [0], [0], [1], [0, 0, 1, 1], [], []>} : vector<16x1024xbf16>, vector<1024x128xbf16>, vector<16x128xf32> -> vector<16x128xf32>
    %c0_3 = arith.constant 0 : index
    %c0_4 = arith.constant 0 : index
    %4 = vector.load %arg4[%c0_3, %c0_4] : memref<1x128xf32, #tpu.memory_space<vmem>>, vector<1x128xf32>
    %5 = vector.broadcast %4 : vector<1x128xf32> to vector<16x128xf32>
    %6 = arith.addf %3, %5 : vector<16x128xf32>
    %cst_5 = arith.constant 0.000000e+00 : f32
    %7 = vector.broadcast %cst_5 : f32 to vector<16x128xf32>
    %8 = arith.maximumf %6, %7 : vector<16x128xf32>
    %9 = arith.truncf %8 : vector<16x128xf32> to vector<16x128xbf16>
    %c0_6 = arith.constant 0 : index
    %c0_7 = arith.constant 0 : index
    %10 = vector.load %arg5[%c0_6, %c0_7] : memref<128x128xbf16, #tpu.memory_space<vmem>>, vector<128x128xbf16>
    %cst_8 = arith.constant dense<0.000000e+00> : vector<16x128xf32>
    %11 = tpu.matmul %9, %10, %cst_8 {dimension_numbers = #tpu.dot_dimension_numbers<[1], [0], [0], [1], [0, 0, 1, 1], [], []>} : vector<16x128xbf16>, vector<128x128xbf16>, vector<16x128xf32> -> vector<16x128xf32>
    %c0_9 = arith.constant 0 : index
    %c0_10 = arith.constant 0 : index
    %12 = vector.load %arg6[%c0_9, %c0_10] : memref<1x128xf32, #tpu.memory_space<vmem>>, vector<1x128xf32>
    %13 = vector.broadcast %12 : vector<1x128xf32> to vector<16x128xf32>
    %14 = arith.addf %11, %13 : vector<16x128xf32>
    %cst_11 = arith.constant dense<0xFF800000> : vector<16xf32>
    %15 = vector.multi_reduction <maximumf>, %14, %cst_11 [1] : vector<16x128xf32> to vector<16xf32>
    %16 = vector.shape_cast %15 : vector<16xf32> to vector<16x1xf32>
    %17 = vector.broadcast %16 : vector<16x1xf32> to vector<16x128xf32>
    %18 = arith.subf %14, %17 : vector<16x128xf32>
    %19 = math.exp %18 : vector<16x128xf32>
    %cst_12 = arith.constant dense<0.000000e+00> : vector<16xf32>
    %20 = vector.multi_reduction <add>, %19, %cst_12 [1] : vector<16x128xf32> to vector<16xf32>
    %21 = vector.shape_cast %20 : vector<16xf32> to vector<16x1xf32>
    %22 = math.log %21 : vector<16x1xf32>
    %23 = vector.broadcast %22 : vector<16x1xf32> to vector<16x128xf32>
    %24 = arith.subf %18, %23 : vector<16x128xf32>
    %c0_13 = arith.constant 0 : index
    %c0_14 = arith.constant 0 : index
    %25 = vector.load %arg7[%c0_13, %c0_14] : memref<16x128xf32, #tpu.memory_space<vmem>>, vector<16x128xf32>
    tpu.vector_store %arg7[%c0_13, %c0_14], %24 {strides = array<i32>} : memref<16x128xf32, #tpu.memory_space<vmem>>, vector<16x128xf32>,
    return
  }
  func.func @transform_0(%arg0: i32, %arg1: memref<1xi32, #tpu.memory_space<smem>>) -> (i32, i32) {
    %c0_i32 = arith.constant 0 : i32
    %c0_i32_0 = arith.constant 0 : i32
    return %arg0, %c0_i32 : i32, i32
  }
  func.func @transform_1(%arg0: i32, %arg1: memref<1xi32, #tpu.memory_space<smem>>) -> (i32, i32) {
    %c0_i32 = arith.constant 0 : i32
    %c0_i32_0 = arith.constant 0 : i32
    %c0_i32_1 = arith.constant 0 : i32
    return %c0_i32, %c0_i32_0 : i32, i32
  }
  func.func @transform_2(%arg0: i32, %arg1: memref<1xi32, #tpu.memory_space<smem>>) -> (i32, i32) {
    %c0_i32 = arith.constant 0 : i32
    %c0_i32_0 = arith.constant 0 : i32
    %c0_i32_1 = arith.constant 0 : i32
    return %c0_i32, %c0_i32_0 : i32, i32
  }
  func.func @transform_3(%arg0: i32, %arg1: memref<1xi32, #tpu.memory_space<smem>>) -> (i32, i32) {
    %c0_i32 = arith.constant 0 : i32
    %c0_i32_0 = arith.constant 0 : i32
    %c0_i32_1 = arith.constant 0 : i32
    return %c0_i32, %c0_i32_0 : i32, i32
  }
  func.func @transform_4(%arg0: i32, %arg1: memref<1xi32, #tpu.memory_space<smem>>) -> (i32, i32) {
    %c0_i32 = arith.constant 0 : i32
    %c0_i32_0 = arith.constant 0 : i32
    %c0_i32_1 = arith.constant 0 : i32
    return %c0_i32, %c0_i32_0 : i32, i32
  }
  func.func @transform_5(%arg0: i32, %arg1: memref<1xi32, #tpu.memory_space<smem>>) -> (i32, i32) {
    %c0_i32 = arith.constant 0 : i32
    %c0_i32_0 = arith.constant 0 : i32
    return %arg0, %c0_i32 : i32, i32
  }
}

</mosaic_0001>

<bundles_post_ra>
// kernel: tpu_custom_call.1
= control target key start
LH: loop header
LB: loop body
LE: loop exit
PB: predicated region body
PF: predicated region fallthrough
CT: control target
= control target key end

     0   :  { %12 = vsyncpa [#allocation5], 0  ;;  %s1392_s0 = inlined_call_operand.<no memory space> [shape: s32[1], index: 0, kind: input, shape index: {}]   ;;  %s1393_s1 = inlined_call_operand.hbm [shape: f32[16,1024], index: 1, kind: input, shape index: {}]   ;;  %s1394_s2 = inlined_call_operand.hbm [shape: bf16[1024,128], index: 2, kind: input, shape index: {}]   ;;  %s1395_s3 = inlined_call_operand.vmem [shape: f32[1,128], index: 3, kind: input, shape index: {}]   ;;  %s1396_s4 = inlined_call_operand.hbm [shape: bf16[128,128], index: 4, kind: input, shape index: {}]   ;;  %s1397_s5 = inlined_call_operand.vmem [shape: f32[1,128], index: 5, kind: input, shape index: {}]   ;;  %s1398_s6 = inlined_call_operand.hbm [shape: f32[16,128], index: 6, kind: output, shape index: {}]  }
   0x1   :  { %13 = vsyncpa [#allocation8], 0  ;;  %s32_s22 = sshll.u32 %s1394_s2, 4  ;;  %s33_s22 = int_to_ptr.hbm [resolvable:$true] %s32_s22 }
   0x2   :  { %14 = vsyncpa [#allocation6], 0  ;;  %s1330_s23 = smov [#allocation7]   ;;  %s19_s27 = sshll.u32 %s1393_s1, 4  ;;  %s20_s27 = int_to_ptr.hbm [resolvable:$true] %s19_s27 }
   0x3   :  { %s34_s24 = sshll.u32 %s1330_s23, 4  ;;  %s1331_s28 = smov 64   ;;  %s35_s24 = int_to_ptr.vmem [resolvable:$true] %s34_s24 }
   0x4   :  { %s1332_s29 = smov 4   ;;  %s1333_s30 = smov [#allocation4]  }
   0x5   :  { %40 = dma.hbm_to_vmem [thread:$0]  %s33_s22, 8192, %s35_s24, [#allocation8], %s1331_s28, %s1331_s28, %s1332_s29  }
   0x6   :  { %s21_s7 = sshll.u32 %s1333_s30, 4  ;;  %s47_s2 = sshll.u32 %s1396_s4, 4  ;;  %s22_s7 = int_to_ptr.vmem [resolvable:$true] %s21_s7  ;;  %s48_s2 = int_to_ptr.hbm [resolvable:$true] %s47_s2 }
   0x7   :  { %s1334_s10 = smov 1024   ;;  %s1335_s11 = smov [#allocation9]  }
   0x8   :  { %27 = dma.hbm_to_vmem [thread:$0]  %s20_s27, 2048, %s22_s7, [#allocation5], %s1334_s10, %s1334_s10, %s1331_s28  }
   0x9   :  { %s49_s12 = sshll.u32 %s1335_s11, 4  ;;  %s50_s12 = int_to_ptr.vmem [resolvable:$true] %s49_s12 }
   0xa   :  { %55 = dma.hbm_to_vmem [thread:$0]  %s48_s2, 1024, %s50_s12, [#allocation8], %s1331_s28, %s1331_s28, %s1332_s29  }
   0xb   :  { %1324 = dma.done.wait [#allocation5], 2048  }
   0xc   :  { %1325 = vsyncadd [#allocation5], 4294965248 }
   0xd   :  { %1326 = dma.done.wait [#allocation8], 9216  }
   0xe   :  { %1327 = vsyncadd [#allocation8], 4294958080  ;;  %v1144_v0 = vld [vmem:[#allocation7 + $0x38] sm:$0xff]  ;;  %v1143_v4 = vld [vmem:[#allocation7 + $0x30] sm:$0xff]  ;;  %s835_s17 = sshll.u32 %s1398_s6, 4  ;;  %s1337_s18 = smov 128   ;;  %s836_s17 = int_to_ptr.hbm [resolvable:$true] %s835_s17 }
   0xf   :  { %v1152_v1 = vld [vmem:[#allocation7 + $0x78] sm:$0xff]  ;;  %610 = vmatpush.bf16.msra.mxu0 %v1144_v0  ;;  %v1151_v5 = vld [vmem:[#allocation7 + $0x70] sm:$0xff]  ;;  %v1142_v8 = vld [vmem:[#allocation7 + $0x28] sm:$0xff]  ;;  %s1338_s19 = smov 8  }
  0x10   :  { %v1160_v2 = vld [vmem:[#allocation7 + $0xb8] sm:$0xff]  ;;  %624 = vmatpush.bf16.msra.mxu1 %v1152_v1  ;;  %v1159_v6 = vld [vmem:[#allocation7 + $0xb0] sm:$0xff]  ;;  %v1150_v9 = vld [vmem:[#allocation7 + $0x68] sm:$0xff] }
  0x11   :  { %v1168_v3 = vld [vmem:[#allocation7 + $0xf8] sm:$0xff]  ;;  %638 = vmatpush.bf16.msra.mxu2 %v1160_v2  ;;  %v1167_v7 = vld [vmem:[#allocation7 + $0xf0] sm:$0xff]  ;;  %v1158_v10 = vld [vmem:[#allocation7 + $0xa8] sm:$0xff] }
  0x12   :  { %652 = vmatpush.bf16.msra.mxu3 %v1168_v3  ;;  %v1166_v11 = vld [vmem:[#allocation7 + $0xe8] sm:$0xff]  ;;  %v1141_v12 = vld [vmem:[#allocation7 + $0x20] sm:$0xff]  ;;  %v1140_v16 = vld [vmem:[#allocation7 + $0x18] sm:$0xff] }
  0x13   :  { %611 = vmatpush.bf16.msra.mxu0 %v1143_v4  ;;  %v1149_v13 = vld [vmem:[#allocation7 + $0x60] sm:$0xff]  ;;  %v1148_v17 = vld [vmem:[#allocation7 + $0x58] sm:$0xff]  ;;  %v1139_v20 = vld [vmem:[#allocation7 + $0x10] sm:$0xff] }
  0x14   :  { %625 = vmatpush.bf16.msra.mxu1 %v1151_v5  ;;  %v1157_v14 = vld [vmem:[#allocation7 + $0xa0] sm:$0xff]  ;;  %v1156_v18 = vld [vmem:[#allocation7 + $0x98] sm:$0xff]  ;;  %v1147_v21 = vld [vmem:[#allocation7 + $0x50] sm:$0xff] }
  0x15   :  { %639 = vmatpush.bf16.msra.mxu2 %v1159_v6  ;;  %v1165_v15 = vld [vmem:[#allocation7 + $0xe0] sm:$0xff]  ;;  %v1164_v19 = vld [vmem:[#allocation7 + $0xd8] sm:$0xff]  ;;  %v1155_v22 = vld [vmem:[#allocation7 + $0x90] sm:$0xff] }
  0x16   :  { %653 = vmatpush.bf16.msra.mxu3 %v1167_v7  ;;  %v1163_v23 = vld [vmem:[#allocation7 + $0xd0] sm:$0xff]  ;;  %v1138_v24 = vld [vmem:[#allocation7 + $0x8] sm:$0xff]  ;;  %v1137_v28 = vld [vmem:[#allocation7] sm:$0xff] }
  0x17   :  { %612 = vmatpush.bf16.msra.mxu0 %v1142_v8  ;;  %v1146_v25 = vld [vmem:[#allocation7 + $0x48] sm:$0xff]  ;;  %v1145_v29 = vld [vmem:[#allocation7 + $0x40] sm:$0xff]  ;;  %v1176_v32 = vld [vmem:[#allocation7 + $0x138] sm:$0xff] }
  0x18   :  { %626 = vmatpush.bf16.msra.mxu1 %v1150_v9  ;;  %v1154_v26 = vld [vmem:[#allocation7 + $0x88] sm:$0xff]  ;;  %v1153_v30 = vld [vmem:[#allocation7 + $0x80] sm:$0xff]  ;;  %v1184_v33 = vld [vmem:[#allocation7 + $0x178] sm:$0xff] }
  0x19   :  { %640 = vmatpush.bf16.msra.mxu2 %v1158_v10  ;;  %v1162_v27 = vld [vmem:[#allocation7 + $0xc8] sm:$0xff]  ;;  %v1161_v31 = vld [vmem:[#allocation7 + $0xc0] sm:$0xff]  ;;  %v72_v34 = vld [vmem:[#allocation4 + $0x10] sm:$0xff] }
  0x1a   :  { %654 = vmatpush.bf16.msra.mxu3 %v1166_v11  ;;  %v80_v35 = vld [vmem:[#allocation4 + $0x50] sm:$0xff]  ;;  %v70_v36 = vld [vmem:[#allocation4] sm:$0xff]  ;;  %v73_v38 = vld [vmem:[#allocation4 + $0x18] sm:$0xff] }
  0x1b   :  { %613 = vmatpush.bf16.msra.mxu0 %v1141_v12  ;;  %v78_v37 = vld [vmem:[#allocation4 + $0x40] sm:$0xff]  ;;  %v81_v39 = vld [vmem:[#allocation4 + $0x58] sm:$0xff]  ;;  %v71_v40 = vld [vmem:[#allocation4 + $0x8] sm:$0xff]  ;;  %v88_v44 = vpack.c.bf16 %v80_v35, %v72_v34 }
  0x1c   :  { %627 = vmatpush.bf16.msra.mxu1 %v1149_v13  ;;  %v79_v41 = vld [vmem:[#allocation4 + $0x48] sm:$0xff]  ;;  %v1192_v42 = vld [vmem:[#allocation7 + $0x1b8] sm:$0xff]  ;;  %v86_v45 = vpack.c.bf16 %v78_v37, %v70_v36  ;;  %v89_v46 = vpack.c.bf16 %v81_v39, %v73_v38  ;;  %v1175_v48 = vld [vmem:[#allocation7 + $0x130] sm:$0xff] }
  0x1d   :  { %641 = vmatpush.bf16.msra.mxu2 %v1157_v14  ;;  %v1200_v43 = vld [vmem:[#allocation7 + $0x1f8] sm:$0xff]  ;;  %v87_v47 = vpack.c.bf16 %v79_v41, %v71_v40  ;;  %v1183_v49 = vld [vmem:[#allocation7 + $0x170] sm:$0xff]  ;;  %v1174_v52 = vld [vmem:[#allocation7 + $0x128] sm:$0xff] }
  0x1e   :  { %655 = vmatpush.bf16.msra.mxu3 %v1165_v15  ;;  %v1191_v50 = vld [vmem:[#allocation7 + $0x1b0] sm:$0xff]  ;;  %v1182_v53 = vld [vmem:[#allocation7 + $0x168] sm:$0xff]  ;;  %v1173_v56 = vld [vmem:[#allocation7 + $0x120] sm:$0xff] }
  0x1f   :  { %614 = vmatpush.bf16.msra.mxu0 %v1140_v16  ;;  %v1199_v51 = vld [vmem:[#allocation7 + $0x1f0] sm:$0xff]  ;;  %v1190_v54 = vld [vmem:[#allocation7 + $0x1a8] sm:$0xff]  ;;  %v1181_v57 = vld [vmem:[#allocation7 + $0x160] sm:$0xff] }
  0x20   :  { %628 = vmatpush.bf16.msra.mxu1 %v1148_v17  ;;  %v1198_v55 = vld [vmem:[#allocation7 + $0x1e8] sm:$0xff]  ;;  %v1189_v58 = vld [vmem:[#allocation7 + $0x1a0] sm:$0xff]  ;;  %v1172_v60 = vld [vmem:[#allocation7 + $0x118] sm:$0xff] }
  0x21   :  { %642 = vmatpush.bf16.msra.mxu2 %v1156_v18  ;;  %v1197_v59 = vld [vmem:[#allocation7 + $0x1e0] sm:$0xff]  ;;  %v1180_v61 = vld [vmem:[#allocation7 + $0x158] sm:$0xff]  ;;  %v1171_v0 = vld [vmem:[#allocation7 + $0x110] sm:$0xff] }
  0x22   :  { %656 = vmatpush.bf16.msra.mxu3 %v1164_v19  ;;  %v1188_v62 = vld [vmem:[#allocation7 + $0x198] sm:$0xff]  ;;  %v1179_v1 = vld [vmem:[#allocation7 + $0x150] sm:$0xff]  ;;  %v1170_v4 = vld [vmem:[#allocation7 + $0x108] sm:$0xff] }
  0x23   :  { %615 = vmatpush.bf16.msra.mxu0 %v1139_v20  ;;  %v1196_v63 = vld [vmem:[#allocation7 + $0x1d8] sm:$0xff]  ;;  %v1187_v2 = vld [vmem:[#allocation7 + $0x190] sm:$0xff]  ;;  %v1178_v5 = vld [vmem:[#allocation7 + $0x148] sm:$0xff] }
  0x24   :  { %629 = vmatpush.bf16.msra.mxu1 %v1147_v21  ;;  %v1195_v3 = vld [vmem:[#allocation7 + $0x1d0] sm:$0xff]  ;;  %v1186_v6 = vld [vmem:[#allocation7 + $0x188] sm:$0xff]  ;;  %v1169_v8 = vld [vmem:[#allocation7 + $0x100] sm:$0xff] }
  0x25   :  { %643 = vmatpush.bf16.msra.mxu2 %v1155_v22  ;;  %v1194_v7 = vld [vmem:[#allocation7 + $0x1c8] sm:$0xff]  ;;  %v1177_v9 = vld [vmem:[#allocation7 + $0x140] sm:$0xff]  ;;  %v76_v16 = vld [vmem:[#allocation4 + $0x30] sm:$0xff] }
  0x26   :  { %657 = vmatpush.bf16.msra.mxu3 %v1163_v23  ;;  %v1185_v10 = vld [vmem:[#allocation7 + $0x180] sm:$0xff]  ;;  %v75_v14 = vld [vmem:[#allocation4 + $0x28] sm:$0xff]  ;;  %v84_v17 = vld [vmem:[#allocation4 + $0x70] sm:$0xff] }
  0x27   :  { %616 = vmatpush.bf16.msra.mxu0 %v1138_v24  ;;  %v1193_v11 = vld [vmem:[#allocation7 + $0x1c0] sm:$0xff]  ;;  %v83_v15 = vld [vmem:[#allocation4 + $0x68] sm:$0xff]  ;;  %v77_v18 = vld [vmem:[#allocation4 + $0x38] sm:$0xff]  ;;  %v92_v22 = vpack.c.bf16 %v84_v17, %v76_v16 }
  0x28   :  { %630 = vmatpush.bf16.msra.mxu1 %v1146_v25  ;;  %v74_v12 = vld [vmem:[#allocation4 + $0x20] sm:$0xff]  ;;  %v85_v19 = vld [vmem:[#allocation4 + $0x78] sm:$0xff]  ;;  %v91_v21 = vpack.c.bf16 %v83_v15, %v75_v14  ;;  %v1207_v25 = vld [vmem:[#allocation9 + $0x30] sm:$0xff] }
  0x29   :  { %644 = vmatpush.bf16.msra.mxu2 %v1154_v26  ;;  %v82_v13 = vld [vmem:[#allocation4 + $0x60] sm:$0xff]  ;;  %v93_v23 = vpack.c.bf16 %v85_v19, %v77_v18  ;;  %v1208_v24 = vld [vmem:[#allocation9 + $0x38] sm:$0xff]  ;;  %v1206_v26 = vld [vmem:[#allocation9 + $0x28] sm:$0xff] }
  0x2a   :  { %658 = vmatpush.bf16.msra.mxu3 %v1162_v27  ;;  %v90_v20 = vpack.c.bf16 %v82_v13, %v74_v12  ;;  %v1205_v27 = vld [vmem:[#allocation9 + $0x20] sm:$0xff] }
  0x2b   :  { %617 = vmatpush.bf16.msra.mxu0 %v1137_v28  ;;  %v1204_v28 = vld [vmem:[#allocation9 + $0x18] sm:$0xff]  ;;  %v1218_v34 = vld [vmem:[%s1395_s3] ss:$0 sm:$0xff] }
  0x2c   :  { %631 = vmatpush.bf16.msra.mxu1 %v1145_v29  ;;  %v1203_v29 = vld [vmem:[#allocation9 + $0x10] sm:$0xff] }
  0x2d   :  { %645 = vmatpush.bf16.msra.mxu2 %v1153_v30 }
  0x2e   :  { %659 = vmatpush.bf16.msra.mxu3 %v1161_v31  ;;  %618 = vmatmul.bf16.vlgmr.msra.gmra.mxu0 %v86_v45  ;;  %v1202_v31 = vld [vmem:[#allocation9 + $0x8] sm:$0xff] }
  0x2f   :  { %666 = vmatpush.bf16.msrb.mxu0 %v1176_v32  ;;  %632 = vmatmul.bf16.vlgmr.msra.gmra.mxu1 %v87_v47 }
  0x30   :  { %680 = vmatpush.bf16.msrb.mxu1 %v1184_v33  ;;  %646 = vmatmul.bf16.vlgmr.msra.gmra.mxu2 %v88_v44  ;;  %v1201_v33 = vld [vmem:[#allocation9] sm:$0xff] }
  0x31   :  { %694 = vmatpush.bf16.msrb.mxu2 %v1192_v42  ;;  %660 = vmatmul.bf16.vlgmr.msra.gmra.mxu3 %v89_v46 }
  0x32   :  { %708 = vmatpush.bf16.msrb.mxu3 %v1200_v43 }
  0x33   :  { %667 = vmatpush.bf16.msrb.mxu0 %v1175_v48 }
  0x34   :  { %681 = vmatpush.bf16.msrb.mxu1 %v1183_v49 }
  0x35   :  { %695 = vmatpush.bf16.msrb.mxu2 %v1191_v50 }
  0x36   :  { %709 = vmatpush.bf16.msrb.mxu3 %v1199_v51 }
  0x37   :  { %668 = vmatpush.bf16.msrb.mxu0 %v1174_v52 }
  0x38   :  { %682 = vmatpush.bf16.msrb.mxu1 %v1182_v53 }
  0x39   :  { %696 = vmatpush.bf16.msrb.mxu2 %v1190_v54 }
  0x3a   :  { %710 = vmatpush.bf16.msrb.mxu3 %v1198_v55 }
  0x3b   :  { %669 = vmatpush.bf16.msrb.mxu0 %v1173_v56 }
  0x3c   :  { %683 = vmatpush.bf16.msrb.mxu1 %v1181_v57 }
  0x3d   :  { %697 = vmatpush.bf16.msrb.mxu2 %v1189_v58 }
  0x3e   :  { %711 = vmatpush.bf16.msrb.mxu3 %v1197_v59 }
  0x3f   :  { %670 = vmatpush.bf16.msrb.mxu0 %v1172_v60 }
  0x40   :  { %684 = vmatpush.bf16.msrb.mxu1 %v1180_v61 }
  0x41   :  { %698 = vmatpush.bf16.msrb.mxu2 %v1188_v62 }
  0x42   :  { %712 = vmatpush.bf16.msrb.mxu3 %v1196_v63 }
  0x43   :  { %671 = vmatpush.bf16.msrb.mxu0 %v1171_v0 }
  0x44   :  { %685 = vmatpush.bf16.msrb.mxu1 %v1179_v1 }
  0x45   :  { %699 = vmatpush.bf16.msrb.mxu2 %v1187_v2 }
  0x46   :  { %713 = vmatpush.bf16.msrb.mxu3 %v1195_v3 }
  0x47   :  { %672 = vmatpush.bf16.msrb.mxu0 %v1170_v4  ;;  %v1219_v4 = vld [vmem:[%s1397_s5] ss:$0 sm:$0xff]  ;;  %s1336_s5 = smov [#allocation10]  }
  0x48   :  { %686 = vmatpush.bf16.msrb.mxu1 %v1178_v5  ;;  %s833_s14 = sshll.u32 %s1336_s5, 4  ;;  %s834_s14 = int_to_ptr.vmem [resolvable:$true] %s833_s14 }
  0x49   :  { %700 = vmatpush.bf16.msrb.mxu2 %v1186_v6 }
  0x4a   :  { %714 = vmatpush.bf16.msrb.mxu3 %v1194_v7 }
  0x4b   :  { %673 = vmatpush.bf16.msrb.mxu0 %v1169_v8 }
  0x4c   :  { %687 = vmatpush.bf16.msrb.mxu1 %v1177_v9 }
  0x4d   :  { %701 = vmatpush.bf16.msrb.mxu2 %v1185_v10 }
  0x4e   :  { %715 = vmatpush.bf16.msrb.mxu3 %v1193_v11  ;;  %674 = vmatmul.bf16.vlgmr.msrb.gmra.mxu0 %v90_v20 }
  0x4f   :  { %688 = vmatmul.bf16.vlgmr.msrb.gmra.mxu1 %v91_v21  ;;  %793 = vmatpush.bf16.msra.mxu0 %v1208_v24 }
  0x50   :  { %702 = vmatmul.bf16.vlgmr.msrb.gmra.mxu2 %v92_v22 }
  0x51   :  { %716 = vmatmul.bf16.vlgmr.msrb.gmra.mxu3 %v93_v23 }
  0x53   :  { %794 = vmatpush.bf16.msra.mxu0 %v1207_v25 }
  0x57   :  { %795 = vmatpush.bf16.msra.mxu0 %v1206_v26 }
  0x5b   :  { %796 = vmatpush.bf16.msra.mxu0 %v1205_v27 }
  0x5f   :  { %797 = vmatpush.bf16.msra.mxu0 %v1204_v28 }
  0x63   :  { %798 = vmatpush.bf16.msra.mxu0 %v1203_v29 }
  0x67   :  { %799 = vmatpush.bf16.msra.mxu0 %v1202_v31 }
  0x6b   :  { %800 = vmatpush.bf16.msra.mxu0 %v1201_v33 }
  0xab   :  { %v619_v30 = vpop.f32.mrf.mxu0 }
  0xac   :  { %v633_v32 = vpop.f32.mrf.mxu1  ;;  %v620_v37 = vadd.f32 %v1218_v34, %v619_v30 }
  0xae   :  { %v634_v40 = vadd.f32 %v633_v32, %v620_v37 }
  0xb3   :  { %v647_v35 = vpop.f32.mrf.mxu2  ;;  %v621_v38 = vpop.f32.mrf.mxu0 }
  0xb4   :  { %v661_v36 = vpop.f32.mrf.mxu3  ;;  %v635_v39 = vpop.f32.mrf.mxu1  ;;  %v622_v41 = vadd.f32 %v1218_v34, %v621_v38  ;;  %v648_v44 = vadd.f32 %v647_v35, %v634_v40 }
  0xb6   :  { %v636_v45 = vadd.f32 %v635_v39, %v622_v41  ;;  %v662_v48 = vadd.f32 %v661_v36, %v648_v44 }
  0xbb   :  { %v649_v42 = vpop.f32.mrf.mxu2 }
  0xbc   :  { %v663_v43 = vpop.f32.mrf.mxu3  ;;  %v650_v49 = vadd.f32 %v649_v42, %v636_v45 }
  0xbe   :  { %v664_v53 = vadd.f32 %v663_v43, %v650_v49 }
  0xcb   :  { %v675_v46 = vpop.f32.mrf.mxu0 }
  0xcc   :  { %v689_v47 = vpop.f32.mrf.mxu1  ;;  %v676_v50 = vadd.f32 %v675_v46, %v662_v48 }
  0xce   :  { %v690_v55 = vadd.f32 %v689_v47, %v676_v50 }
  0xd3   :  { %v703_v51 = vpop.f32.mrf.mxu2  ;;  %v677_v54 = vpop.f32.mrf.mxu0 }
  0xd4   :  { %v717_v52 = vpop.f32.mrf.mxu3  ;;  %v678_v56 = vadd.f32 %v677_v54, %v664_v53  ;;  %v704_v57 = vadd.f32 %v703_v51, %v690_v55  ;;  %v691_v58 = vpop.f32.mrf.mxu1 }
  0xd6   :  { %v692_v59 = vadd.f32 %v691_v58, %v678_v56  ;;  %v718_v61 = vadd.f32 %v717_v52, %v704_v57 }
  0xd8   :  { %v722_v1 = vmax.f32 %v718_v61, 0.0 }
  0xdb   :  { %v705_v60 = vpop.f32.mrf.mxu2 }
  0xdc   :  { %v706_v62 = vadd.f32 %v705_v60, %v692_v59  ;;  %v719_v63 = vpop.f32.mrf.mxu3 }
  0xde   :  { %v720_v0 = vadd.f32 %v719_v63, %v706_v62 }
  0xe0   :  { %v723_v2 = vmax.f32 %v720_v0, 0.0 }
  0xe2   :  { %v724_v3 = vpack.c.bf16 %v723_v2, %v722_v1 }
  0xe4   :  { %801 = vmatmul.bf16.vlgmr.msra.gmra.mxu0 %v724_v3 }
 0x161   :  { %v802_v5 = vpop.f32.mrf.mxu0 }
 0x162   :  { %v803_v6 = vadd.f32 %v1219_v4, %v802_v5 }
 0x164   :  { %807 = vmax.xlane.f32.xlu0 %v803_v6 }
 0x169   :  { %v804_v7 = vpop.f32.mrf.mxu0 }
 0x16a   :  { %v805_v8 = vadd.f32 %v1219_v4, %v804_v7 }
 0x16c   :  { %809 = vmax.xlane.f32.xlu0 %v805_v8 }
 0x1d7   :  { %v808_v9 = vpop.xlane.xlu0 %807 }
 0x1d8   :  { %v811_v10 = vsub.f32 %v803_v6, %v808_v9 }
 0x1da   :  { %v813_v11 = vmul.f32 1.442695, %v811_v10 }
 0x1dc   :  { %1220 = vpow2.f32 %v813_v11 }
 0x1df   :  { %v810_v12 = vpop.xlane.xlu0 %809 }
 0x1e0   :  { %v812_v13 = vsub.f32 %v805_v8, %v810_v12 }
 0x1e2   :  { %v1221_v14 = vpop.eup %1220  ;;  %v815_v15 = vmul.f32 1.442695, %v812_v13 }
 0x1e3   :  { %817 = vadd.xlane.f32.xlu1 %v1221_v14 }
 0x1e4   :  { %1222 = vpow2.f32 %v815_v15 }
 0x1ea   :  { %v1223_v16 = vpop.eup %1222 }
 0x1eb   :  { %819 = vadd.xlane.f32.xlu1 %v1223_v16 }
 0x256   :  { %v818_v17 = vpop.xlane.xlu1 %817 }
 0x257   :  { %1224 = vlog2.f32 %v818_v17 }
 0x25d   :  { %v1225_v18 = vpop.eup %1224 }
 0x25e   :  { %v822_v19 = vmul.f32 0.6931472, %v1225_v18  ;;  %v820_v20 = vpop.xlane.xlu1 %819 }
 0x25f   :  { %1226 = vlog2.f32 %v820_v20 }
 0x260   :  { %v825_v21 = vsub.f32 %v811_v10, %v822_v19 }
 0x262   :  { %827 = vst [vmem:[#allocation10] sm:$0xff] %v825_v21 }
 0x265   :  { %v1227_v22 = vpop.eup %1226 }
 0x266   :  { %v824_v23 = vmul.f32 0.6931472, %v1227_v22 }
 0x268   :  { %v826_v24 = vsub.f32 %v812_v13, %v824_v23 }
 0x26a   :  { %828 = vst [vmem:[#allocation10 + $0x8] sm:$0xff] %v826_v24 }
 0x26b   :  { %841 = dma.vmem_to_hbm [thread:$0]  %s834_s14, 256, %s836_s17, [#allocation6], %s1337_s18, %s1337_s18, %s1338_s19  }
 0x26c   :  { %1328 = dma.done.wait [#allocation6], 256  }
 0x26d   :  { %1329 = vsyncadd [#allocation6], 4294967040 }
 0x26e   :  { %846 = vsyncpa [#allocation5], 1 }
 0x26f   :  { %847 = vsyncpa [#allocation8], 1 }
 0x270   :  { %848 = vsyncpa [#allocation6], 1 }

</bundles_post_ra>
